<compile_context>
chip_gen: v6e
topology: v6e:2x2x1
jax: 0.10.0
libtpu: 0.0.40
codegen_flags: <defaults>
</compile_context>

<pallas_src>
import jax
import jax.numpy as jnp
from jax.experimental import pallas as pl
from jax.experimental.pallas import tpu as pltpu


def _round_up(a, b):
    return (a + b - 1) // b * b


def _make_kernel(F, Fp, compute_dtype):
    pad_cols = Fp - F
    cd = jnp.dtype(compute_dtype)

    def kernel(x_ref, nb_ref, mnb_ref, w1x_ref, w1n_ref, w1p_ref, b1_ref,
               w2_ref, b2_ref, mi_ref, so_ref):
        # Elementwise feature prep in f32 (safe on v5e's non-bf16 VPU).
        xf = x_ref[...].astype(jnp.float32)
        nbf = nb_ref[...].astype(jnp.float32)
        prod = xf * nbf

        # fc1 with the concat removed and (nb+x)/2 folded into the weights:
        #   h = x @ (Wa + Wd/2)^T + nb @ (Wb + Wd/2)^T + (nb*x) @ Wc^T + b1
        h = jnp.dot(xf.astype(cd), w1x_ref[...],
                    preferred_element_type=jnp.float32)
        h = h + jnp.dot(nbf.astype(cd), w1n_ref[...],
                        preferred_element_type=jnp.float32)
        h = h + jnp.dot(prod.astype(cd), w1p_ref[...],
                        preferred_element_type=jnp.float32)
        h = jnp.maximum(h + b1_ref[...], 0.0)

        # fc2
        mi = jnp.dot(h.astype(cd), w2_ref[...],
                     preferred_element_type=jnp.float32)
        mi = mi + b2_ref[...]
        mi_ref[...] = mi.astype(mi_ref.dtype)

        # support = missing - masked_neighbor (widen mnb to the lane-dense
        # padded width; padded lanes are sliced off in the wrapper).
        mnb = mnb_ref[...].astype(jnp.float32)
        if pad_cols:
            mnb = jnp.concatenate(
                [mnb, jnp.zeros((mnb.shape[0], pad_cols), jnp.float32)],
                axis=-1)
        so_ref[...] = (mi - mnb).astype(so_ref.dtype)

    return kernel


def relation_f(x, neighbor, masked_neighbor, w1, b1, w2, b2, *,
               tm=512, compute_dtype=None):
    """Pallas implementation of RelationF.forward.

    x, neighbor, masked_neighbor : (N, F) arrays (f32 or bf16)
    w1 : (F, 4F) fc1 weight (PyTorch layout: out, in)
    b1 : (F,)
    w2 : (F, F)  fc2 weight (out, in)
    b2 : (F,)
    Returns (missing_info, support_out), each (N, F) in x.dtype.
    """
    x = jnp.asarray(x)
    neighbor = jnp.asarray(neighbor)
    masked_neighbor = jnp.asarray(masked_neighbor)
    N, F = x.shape
    assert w1.shape == (F, 4 * F)
    assert w2.shape == (F, F)

    out_dtype = x.dtype
    cd = jnp.dtype(compute_dtype) if compute_dtype is not None else jnp.dtype(
        jnp.float32)

    # --- weight prep: split W1, fold the 0.5*(nb+x) term, transpose to
    # --- (in, out), zero-pad output features to a lane-dense multiple of 128.
    w1f = jnp.asarray(w1, jnp.float32)
    wa = w1f[:, 0 * F:1 * F]
    wb = w1f[:, 1 * F:2 * F]
    wc = w1f[:, 2 * F:3 * F]
    wd = w1f[:, 3 * F:4 * F]
    w1x = (wa + 0.5 * wd).T                      # (F, F) multiplies x
    w1n = (wb + 0.5 * wd).T                      # (F, F) multiplies neighbor
    w1p = wc.T                                   # (F, F) multiplies nb*x
    w2t = jnp.asarray(w2, jnp.float32).T         # (F, F)

    Fp = _round_up(F, 128)
    po = Fp - F
    if po:
        w1x = jnp.pad(w1x, ((0, 0), (0, po)))
        w1n = jnp.pad(w1n, ((0, 0), (0, po)))
        w1p = jnp.pad(w1p, ((0, 0), (0, po)))
        w2t = jnp.pad(w2t, ((0, po), (0, po)))
    b1r = jnp.pad(jnp.asarray(b1, jnp.float32), (0, po)).reshape(1, Fp)
    b2r = jnp.pad(jnp.asarray(b2, jnp.float32), (0, po)).reshape(1, Fp)
    w1x = w1x.astype(cd)
    w1n = w1n.astype(cd)
    w1p = w1p.astype(cd)
    w2t = w2t.astype(cd)

    # --- row tile: big by default (mem-bound), sublane-aligned for the input
    # --- dtype, and clamped so the grid keeps >= 2 steps when N allows
    # --- (feeds both v7x TensorCores).
    sub = {4: 8, 2: 16, 1: 32}.get(jnp.dtype(x.dtype).itemsize, 8)
    half = _round_up(max(1, -(-N // 2)), sub)
    tm = max(sub, min(_round_up(int(tm), sub), half))
    grid = (pl.cdiv(N, tm),)

    # --- VMEM budget + cost estimate.
    in_b = jnp.dtype(x.dtype).itemsize
    out_b = jnp.dtype(out_dtype).itemsize
    w_b = jnp.dtype(cd).itemsize
    block_bytes = 3 * tm * F * in_b + 2 * tm * Fp * out_b
    weight_bytes = (3 * F * Fp + Fp * Fp) * w_b + 2 * Fp * 4
    vmem_need = 2 * (block_bytes + weight_bytes)         # double-buffered
    vmem_limit = int(min(max(vmem_need + (8 << 20), 32 << 20), 64 << 20))

    cost = pl.CostEstimate(
        flops=2 * N * (3 * F * Fp + Fp * Fp),
        transcendentals=0,
        bytes_accessed=3 * N * F * in_b + 2 * N * Fp * out_b + weight_bytes,
    )

    row_in = pl.BlockSpec((tm, F), lambda i: (i, 0))
    row_out = pl.BlockSpec((tm, Fp), lambda i: (i, 0))
    full = lambda shape: pl.BlockSpec(shape, lambda i: (0, 0))

    mi, so = pl.pallas_call(
        _make_kernel(F, Fp, cd),
        out_shape=(jax.ShapeDtypeStruct((N, Fp), out_dtype),
                   jax.ShapeDtypeStruct((N, Fp), out_dtype)),
        grid_spec=pltpu.PrefetchScalarGridSpec(
            num_scalar_prefetch=0,
            grid=grid,
            in_specs=[row_in, row_in, row_in,
                      full((F, Fp)), full((F, Fp)), full((F, Fp)),
                      full((1, Fp)),
                      full((Fp, Fp)), full((1, Fp))],
            out_specs=[row_out, row_out],
        ),
        compiler_params=pltpu.CompilerParams(
            dimension_semantics=("parallel",),
            vmem_limit_bytes=vmem_limit,
        ),
        cost_estimate=cost,
    )(x, neighbor, masked_neighbor, w1x, w1n, w1p, b1r, w2t, b2r)

    if po:
        mi = mi[:, :F]
        so = so[:, :F]
    return mi, so


def _init_linear(key, out_f, in_f):
    # Deterministic init mimicking nn.Linear default (uniform +- 1/sqrt(in)).
    kw, kb = jax.random.split(key)
    bound = 1.0 / (in_f ** 0.5)
    w = jax.random.uniform(kw, (out_f, in_f), jnp.float32, -bound, bound)
    b = jax.random.uniform(kb, (out_f,), jnp.float32, -bound, bound)
    return w, b


def _reference(x, nb, mnb, w1, b1, w2, b2):
    feats = jnp.concatenate([x, nb, nb * x, (nb + x) / 2.0], axis=-1)
    h = jnp.maximum(feats @ w1.T + b1, 0.0)
    mi = h @ w2.T + b2
    return mi, mi - mnb


if __name__ == "__main__":
    key = jax.random.PRNGKey(0)
    k_x, k_nb, k_mnb, k_fc1, k_fc2 = jax.random.split(key, 5)

    N, F = 16, 32  # small shapes: 16 nodes, nfeat=32
    x = jax.random.normal(k_x, (N, F), jnp.float32)
    neighbor = jax.random.normal(k_nb, (N, F), jnp.float32)
    masked_neighbor = jax.random.normal(k_mnb, (N, F), jnp.float32)

    w1, b1 = _init_linear(k_fc1, F, 4 * F)
    w2, b2 = _init_linear(k_fc2, F, F)

    mi_ref, so_ref = _reference(x, neighbor, masked_neighbor, w1, b1, w2, b2)

    # f32 path (default): tight tolerance (only MXU-f32 / reassociation error).
    mi, so = relation_f(x, neighbor, masked_neighbor, w1, b1, w2, b2)
    mi = jax.block_until_ready(mi)
    so = jax.block_until_ready(so)
    assert jnp.allclose(mi, mi_ref, atol=1e-4, rtol=1e-4)
    assert jnp.allclose(so, so_ref, atol=1e-4, rtol=1e-4)

    # bf16 storage + bf16 MXU operands (v6e/v7x HBM-traffic lever); loose tol.
    xb = x.astype(jnp.bfloat16)
    nbb = neighbor.astype(jnp.bfloat16)
    mnbb = masked_neighbor.astype(jnp.bfloat16)
    mi_b, so_b = relation_f(xb, nbb, mnbb, w1, b1, w2, b2,
                            compute_dtype=jnp.bfloat16)
    mi_b = jax.block_until_ready(mi_b)
    so_b = jax.block_until_ready(so_b)
    assert jnp.allclose(mi_b.astype(jnp.float32), mi_ref, atol=0.15, rtol=0.1)
    assert jnp.allclose(so_b.astype(jnp.float32), so_ref, atol=0.15, rtol=0.1)

    print("KERNEL_OK")
</pallas_src>

<mosaic_0001>
module attributes {stable_mosaic.version = 11 : i64} {
  func.func @kernel(%arg0: i32, %arg1: memref<8x32xf32, #tpu.memory_space<vmem>>, %arg2: memref<8x32xf32, #tpu.memory_space<vmem>>, %arg3: memref<8x32xf32, #tpu.memory_space<vmem>>, %arg4: memref<32x128xf32, #tpu.memory_space<vmem>>, %arg5: memref<32x128xf32, #tpu.memory_space<vmem>>, %arg6: memref<32x128xf32, #tpu.memory_space<vmem>>, %arg7: memref<1x128xf32, #tpu.memory_space<vmem>>, %arg8: memref<128x128xf32, #tpu.memory_space<vmem>>, %arg9: memref<1x128xf32, #tpu.memory_space<vmem>>, %arg10: memref<8x128xf32, #tpu.memory_space<vmem>>, %arg11: memref<8x128xf32, #tpu.memory_space<vmem>>) attributes {dimension_semantics = [#tpu.dimension_semantics<parallel>], iteration_bounds = array<i64: 2>, scalar_prefetch = 0 : i64, scratch_operands = 0 : i64, tpu.core_type = #tpu.core_type<tc>, window_params = [{transform_indices = @transform_0, window_bounds = array<i64: 8, 32>}, {transform_indices = @transform_1, window_bounds = array<i64: 8, 32>}, {transform_indices = @transform_2, window_bounds = array<i64: 8, 32>}, {pipeline_mode = #tpu.pipeline_mode<synchronous>, transform_indices = @transform_3, window_bounds = array<i64: 32, 128>}, {pipeline_mode = #tpu.pipeline_mode<synchronous>, transform_indices = @transform_4, window_bounds = array<i64: 32, 128>}, {pipeline_mode = #tpu.pipeline_mode<synchronous>, transform_indices = @transform_5, window_bounds = array<i64: 32, 128>}, {pipeline_mode = #tpu.pipeline_mode<synchronous>, transform_indices = @transform_6, window_bounds = array<i64: 1, 128>}, {pipeline_mode = #tpu.pipeline_mode<synchronous>, transform_indices = @transform_7, window_bounds = array<i64: 128, 128>}, {pipeline_mode = #tpu.pipeline_mode<synchronous>, transform_indices = @transform_8, window_bounds = array<i64: 1, 128>}, {transform_indices = @transform_9, window_bounds = array<i64: 8, 128>}, {transform_indices = @transform_10, window_bounds = array<i64: 8, 128>}]} {
    %c0 = arith.constant 0 : index
    %c0_0 = arith.constant 0 : index
    %0 = vector.load %arg1[%c0, %c0_0] : memref<8x32xf32, #tpu.memory_space<vmem>>, vector<8x32xf32>
    %c0_1 = arith.constant 0 : index
    %c0_2 = arith.constant 0 : index
    %1 = vector.load %arg2[%c0_1, %c0_2] : memref<8x32xf32, #tpu.memory_space<vmem>>, vector<8x32xf32>
    %2 = arith.mulf %0, %1 : vector<8x32xf32>
    %c0_3 = arith.constant 0 : index
    %c0_4 = arith.constant 0 : index
    %3 = vector.load %arg4[%c0_3, %c0_4] : memref<32x128xf32, #tpu.memory_space<vmem>>, vector<32x128xf32>
    %cst = arith.constant dense<0.000000e+00> : vector<8x128xf32>
    %4 = tpu.matmul %0, %3, %cst {dimension_numbers = #tpu.dot_dimension_numbers<[1], [0], [0], [1], [0, 0, 1, 1], [], []>} : vector<8x32xf32>, vector<32x128xf32>, vector<8x128xf32> -> vector<8x128xf32>
    %c0_5 = arith.constant 0 : index
    %c0_6 = arith.constant 0 : index
    %5 = vector.load %arg5[%c0_5, %c0_6] : memref<32x128xf32, #tpu.memory_space<vmem>>, vector<32x128xf32>
    %cst_7 = arith.constant dense<0.000000e+00> : vector<8x128xf32>
    %6 = tpu.matmul %1, %5, %cst_7 {dimension_numbers = #tpu.dot_dimension_numbers<[1], [0], [0], [1], [0, 0, 1, 1], [], []>} : vector<8x32xf32>, vector<32x128xf32>, vector<8x128xf32> -> vector<8x128xf32>
    %7 = arith.addf %4, %6 : vector<8x128xf32>
    %c0_8 = arith.constant 0 : index
    %c0_9 = arith.constant 0 : index
    %8 = vector.load %arg6[%c0_8, %c0_9] : memref<32x128xf32, #tpu.memory_space<vmem>>, vector<32x128xf32>
    %cst_10 = arith.constant dense<0.000000e+00> : vector<8x128xf32>
    %9 = tpu.matmul %2, %8, %cst_10 {dimension_numbers = #tpu.dot_dimension_numbers<[1], [0], [0], [1], [0, 0, 1, 1], [], []>} : vector<8x32xf32>, vector<32x128xf32>, vector<8x128xf32> -> vector<8x128xf32>
    %10 = arith.addf %7, %9 : vector<8x128xf32>
    %c0_11 = arith.constant 0 : index
    %c0_12 = arith.constant 0 : index
    %11 = vector.load %arg7[%c0_11, %c0_12] : memref<1x128xf32, #tpu.memory_space<vmem>>, vector<1x128xf32>
    %12 = vector.broadcast %11 : vector<1x128xf32> to vector<8x128xf32>
    %13 = arith.addf %10, %12 : vector<8x128xf32>
    %cst_13 = arith.constant 0.000000e+00 : f32
    %14 = vector.broadcast %cst_13 : f32 to vector<8x128xf32>
    %15 = arith.maximumf %13, %14 : vector<8x128xf32>
    %c0_14 = arith.constant 0 : index
    %c0_15 = arith.constant 0 : index
    %16 = vector.load %arg8[%c0_14, %c0_15] : memref<128x128xf32, #tpu.memory_space<vmem>>, vector<128x128xf32>
    %cst_16 = arith.constant dense<0.000000e+00> : vector<8x128xf32>
    %17 = tpu.matmul %15, %16, %cst_16 {dimension_numbers = #tpu.dot_dimension_numbers<[1], [0], [0], [1], [0, 0, 1, 1], [], []>} : vector<8x128xf32>, vector<128x128xf32>, vector<8x128xf32> -> vector<8x128xf32>
    %c0_17 = arith.constant 0 : index
    %c0_18 = arith.constant 0 : index
    %18 = vector.load %arg9[%c0_17, %c0_18] : memref<1x128xf32, #tpu.memory_space<vmem>>, vector<1x128xf32>
    %19 = vector.broadcast %18 : vector<1x128xf32> to vector<8x128xf32>
    %20 = arith.addf %17, %19 : vector<8x128xf32>
    %c0_19 = arith.constant 0 : index
    %c0_20 = arith.constant 0 : index
    %21 = vector.load %arg10[%c0_19, %c0_20] : memref<8x128xf32, #tpu.memory_space<vmem>>, vector<8x128xf32>
    tpu.vector_store %arg10[%c0_19, %c0_20], %20 {strides = array<i32>} : memref<8x128xf32, #tpu.memory_space<vmem>>, vector<8x128xf32>,
    %c0_21 = arith.constant 0 : index
    %c0_22 = arith.constant 0 : index
    %22 = vector.load %arg3[%c0_21, %c0_22] : memref<8x32xf32, #tpu.memory_space<vmem>>, vector<8x32xf32>
    %cst_23 = arith.constant 0.000000e+00 : f32
    %23 = vector.broadcast %cst_23 : f32 to vector<8x96xf32>
    %24 = tpu.concatenate %22, %23 in 1 : vector<8x32xf32>, vector<8x96xf32> -> vector<8x128xf32>
    %25 = arith.subf %20, %24 : vector<8x128xf32>
    %c0_24 = arith.constant 0 : index
    %c0_25 = arith.constant 0 : index
    %26 = vector.load %arg11[%c0_24, %c0_25] : memref<8x128xf32, #tpu.memory_space<vmem>>, vector<8x128xf32>
    tpu.vector_store %arg11[%c0_24, %c0_25], %25 {strides = array<i32>} : memref<8x128xf32, #tpu.memory_space<vmem>>, vector<8x128xf32>,
    return
  }
  func.func @transform_0(%arg0: i32) -> (i32, i32) {
    %c0_i32 = arith.constant 0 : i32
    %c0_i32_0 = arith.constant 0 : i32
    return %arg0, %c0_i32 : i32, i32
  }
  func.func @transform_1(%arg0: i32) -> (i32, i32) {
    %c0_i32 = arith.constant 0 : i32
    %c0_i32_0 = arith.constant 0 : i32
    return %arg0, %c0_i32 : i32, i32
  }
  func.func @transform_2(%arg0: i32) -> (i32, i32) {
    %c0_i32 = arith.constant 0 : i32
    %c0_i32_0 = arith.constant 0 : i32
    return %arg0, %c0_i32 : i32, i32
  }
  func.func @transform_3(%arg0: i32) -> (i32, i32) {
    %c0_i32 = arith.constant 0 : i32
    %c0_i32_0 = arith.constant 0 : i32
    %c0_i32_1 = arith.constant 0 : i32
    return %c0_i32, %c0_i32_0 : i32, i32
  }
  func.func @transform_4(%arg0: i32) -> (i32, i32) {
    %c0_i32 = arith.constant 0 : i32
    %c0_i32_0 = arith.constant 0 : i32
    %c0_i32_1 = arith.constant 0 : i32
    return %c0_i32, %c0_i32_0 : i32, i32
  }
  func.func @transform_5(%arg0: i32) -> (i32, i32) {
    %c0_i32 = arith.constant 0 : i32
    %c0_i32_0 = arith.constant 0 : i32
    %c0_i32_1 = arith.constant 0 : i32
    return %c0_i32, %c0_i32_0 : i32, i32
  }
  func.func @transform_6(%arg0: i32) -> (i32, i32) {
    %c0_i32 = arith.constant 0 : i32
    %c0_i32_0 = arith.constant 0 : i32
    %c0_i32_1 = arith.constant 0 : i32
    return %c0_i32, %c0_i32_0 : i32, i32
  }
  func.func @transform_7(%arg0: i32) -> (i32, i32) {
    %c0_i32 = arith.constant 0 : i32
    %c0_i32_0 = arith.constant 0 : i32
    %c0_i32_1 = arith.constant 0 : i32
    return %c0_i32, %c0_i32_0 : i32, i32
  }
  func.func @transform_8(%arg0: i32) -> (i32, i32) {
    %c0_i32 = arith.constant 0 : i32
    %c0_i32_0 = arith.constant 0 : i32
    %c0_i32_1 = arith.constant 0 : i32
    return %c0_i32, %c0_i32_0 : i32, i32
  }
  func.func @transform_9(%arg0: i32) -> (i32, i32) {
    %c0_i32 = arith.constant 0 : i32
    %c0_i32_0 = arith.constant 0 : i32
    return %arg0, %c0_i32 : i32, i32
  }
  func.func @transform_10(%arg0: i32) -> (i32, i32) {
    %c0_i32 = arith.constant 0 : i32
    %c0_i32_0 = arith.constant 0 : i32
    return %arg0, %c0_i32 : i32, i32
  }
}

</mosaic_0001>

<bundles_post_ra>
// kernel: tpu_custom_call.1
= control target key start
LH: loop header
LB: loop body
LE: loop exit
PB: predicated region body
PF: predicated region fallthrough
CT: control target
= control target key end

     0   :  { %s2047_s0 = inlined_call_operand.hbm [shape: f32[16,32], index: 0, kind: input, shape index: {}]   ;;  %s2048_s1 = inlined_call_operand.hbm [shape: f32[16,32], index: 1, kind: input, shape index: {}]   ;;  %s2049_s2 = inlined_call_operand.hbm [shape: f32[16,32], index: 2, kind: input, shape index: {}]   ;;  %s2050_s3 = inlined_call_operand.hbm [shape: f32[32,128], index: 3, kind: input, shape index: {}]   ;;  %s2051_s4 = inlined_call_operand.hbm [shape: f32[32,128], index: 4, kind: input, shape index: {}]   ;;  %s2052_s5 = inlined_call_operand.hbm [shape: f32[32,128], index: 5, kind: input, shape index: {}]   ;;  %s2053_s6 = inlined_call_operand.vmem [shape: f32[1,128], index: 6, kind: input, shape index: {}]   ;;  %s2054_s7 = inlined_call_operand.hbm [shape: f32[128,128], index: 7, kind: input, shape index: {}]   ;;  %s2055_s8 = inlined_call_operand.vmem [shape: f32[1,128], index: 8, kind: input, shape index: {}]   ;;  %s2056_s9 = inlined_call_operand.hbm [shape: f32[16,128], index: 9, kind: output, shape index: {0}]   ;;  %s2057_s10 = inlined_call_operand.hbm [shape: f32[16,128], index: 10, kind: output, shape index: {1}]  }
   0x1   :  { %2078 = sst [smem:[#allocation28_spill]] %s2047_s0 }
   0x2   :  { %2079 = sst [smem:[#allocation29_spill]] %s2048_s1 }
   0x3   :  { %2080 = sst [smem:[#allocation30_spill]] %s2050_s3 }
   0x4   :  { %2081 = sst [smem:[#allocation31_spill]] %s2052_s5 }
   0x5   :  { %2082 = sst [smem:[#allocation32_spill]] %s2057_s10 }
   0x6   :  { %16 = vsyncpa [#allocation3], 0 }
   0x7   :  { %18 = vsyncpa [#allocation3 + $0x1], 0 }
   0x8   :  { %19 = vsyncpa [#allocation6], 0 }
   0x9   :  { %21 = vsyncpa [#allocation6 + $0x1], 0 }
   0xa   :  { %22 = vsyncpa [#allocation9], 0 }
   0xb   :  { %23 = vsyncpa [#allocation12], 0 }
   0xc   :  { %24 = vsyncpa [#allocation4], 0 }
   0xd   :  { %26 = vsyncpa [#allocation4 + $0x1], 0 }
   0xe   :  { %27 = vsyncpa [#allocation16], 0 }
   0xf   :  { %29 = vsyncpa [#allocation16 + $0x1], 0  ;;  %s1677_s13 = smov 0   ;;  %s1679_s14 = smov 0  }
  0x10   :  { %s1681_s15 = smov 0   ;;  %s1683_s16 = smov 0  }
  0x11 LB: > { %2083 = sst [smem:[#allocation23_spill]] %s1595_s13  ;;  %s1609_s17 = smov [#allocation8]   ;;  %s1607_s16 = sphi %s1683_s16, %s2119_s16   ;;  %s1603_s15 = sphi %s1681_s15, %s2123_s15   ;;  %s1599_s14 = sphi %s1679_s14, %s2122_s14   ;;  %s1595_s13 = sphi %s1677_s13, %s2121_s13  }
  0x12   : > { %2084 = sst [smem:[#allocation24_spill]] %s1607_s16  ;;  %s308_s18 = sshll.u32 %s1609_s17, 4  ;;  %s309_s18 = int_to_ptr.vmem [resolvable:$true] %s308_s18 }
  0x13   : > { %s1698_s19 = sadd.s32 4294967295, %s1607_s16   ;;  %p1074_p0 = scmp.ge.s32.totalorder %s1607_s16, 1 }
  0x14   : > { %p2070_p1 = scmp.eq.s32.totalorder %s1698_s19, 0  ;;  %p296_p2 = scmp.lt.s32.totalorder %s1607_s16, 3 }
  0x15   : > { %s1610_s21 = smov [#allocation11]   ;;  %s1324_s24 = scalar_lea.vmem %s309_s18, 512 }
  0x16   : > { %p1703_p3 = pnand %p1074_p0, %p296_p2  ;;  %s334_s22 = sshll.u32 %s1610_s21, 4  ;;  %s335_s22 = int_to_ptr.vmem [resolvable:$true] %s334_s22 }
  0x17   : > { %p1325_p8 = scmp.ne.s32.totalorder %s309_s18, %s1324_s24  ;;  %p1332_p11 = scmp.lt.s32.totalorder %s309_s18, %s309_s18 }
  0x18   : > { %s2085_s20 = scalar_select %p1703_p3, 1, 0 }
  0x19   : > { %p1233_p5 = pneg %p1703_p3  ;;  %p1333_p12 = scmp.lt.s32.totalorder %s1324_s24, %s1324_s24 }
  0x1b   : > { %p1712_p6 = pnand %p1233_p5, %p2070_p1  ;;  %p1334_p13 = por %p1333_p12, %p1332_p11 }
  0x1d   : > { %s2086_s23 = scalar_select %p1712_p6, 1, 0 }
  0x1e   : > { %p2058_p7 = pneg %p1712_p6 }
  0x20   : > { %p1327_p9 = pnand %p1325_p8, %p2058_p7 }
  0x22   : > { %p1328_p10 = pneg %p1327_p9 }
  0x24   : > { %p1335_p0 = pnand %p1334_p13, %p1328_p10 }
  0x26   : > { %1338 = shalt.err (!%p1335_p0)
}
  0x27   : > { %s2059_s25 = smov 128   ;;  %s2061_s26 = smov 8  }
  0x28   : > { %s2087_s3 = sld [smem:[#allocation30_spill]]  ;;  %s1350_s29 = scalar_lea.vmem %s335_s22, 512 }
  0x29   : > { %p1351_p2 = scmp.ne.s32.totalorder %s335_s22, %s1350_s29  ;;  %p1358_p9 = scmp.lt.s32.totalorder %s335_s22, %s335_s22 }
  0x2a   : > { %p1359_p10 = scmp.lt.s32.totalorder %s1350_s29, %s1350_s29 }
  0x2b   : > { %p1353_p5 = pnand %p1351_p2, %p2058_p7 }
  0x2c   : > { %p1360_p11 = por %p1359_p10, %p1358_p9 }
  0x2d   : > { %p1354_p8 = pneg %p1353_p5 }
  0x2e   : > { %1236 = dma.hbm_to_vmem [thread:$0]  (!%p1712_p6), %s2087_s3, 512, %s309_s18, [#allocation9], %s2059_s25, %s2059_s25, %s2061_s26  }
  0x2f   : > { %p1361_p12 = pnand %p1360_p11, %p1354_p8 }
  0x31   : > { %1364 = shalt.err (!%p1361_p12)
}
  0x32   : > { %s2088_s5 = sld [smem:[#allocation31_spill]]  ;;  %s1073_s12 = sadd.s32 4294967294, %s1607_s16  }
  0x33   : > { %s1742_s17 = sadd.s32 1, %s1607_s16   ;;  %s42_s21 = sadd.s32 1, %s1603_s15 }
  0x34   : > { %2089 = sst [smem:[#allocation25_spill]] %s1742_s17  ;;  %s39_s18 = ssub.s32 %s1607_s16, %s1742_s17 }
  0x35   : > { %p40_p13 = scmp.eq.s32.totalorder %s39_s18, 0  ;;  %p49_p0 = scmp.ne.s32.totalorder %s1603_s15, %s1599_s14 }
  0x36   : > { %p50_p2 = scmp.eq.s32.totalorder %s1607_s16, 0  ;;  %p55_p5 = scmp.ne.s32.totalorder %s1599_s14, %s1595_s13 }
  0x37   : > { %s1753_s24 = scalar_select %p40_p13, %s1603_s15, %s42_s21  }
  0x38   : > { %1242 = dma.hbm_to_vmem [thread:$0]  (!%p1712_p6), %s2088_s5, 512, %s335_s22, [#allocation12], %s2059_s25, %s2059_s25, %s2061_s26  }
  0x39   : > { %2090 = sst [smem:[#allocation26_spill]] %s1753_s24  ;;  %p51_p8 = por %p50_p2, %p49_p0 }
  0x3a   : > { %p1757_p9 = por %p2070_p1, %p55_p5  ;;  %p257_p10 = scmp.eq.s32.totalorder %s1698_s19, 1 }
  0x3b   : > { %p263_p11 = scmp.eq.s32.totalorder %s1073_s12, 1  ;;  %p1267_p12 = scmp.lt.s32.totalorder %s1607_s16, 2 }
  0x3c   : > { %s2091_s27 = scalar_select %p1757_p9, 1, 0 }
  0x3d   : > { %s2063_s22 = sand.u32 1, %s1603_s15   ;;  %p1764_p4 = por %p257_p10, %p49_p0 }
  0x3e   : > { %p1768_p7 = por %p263_p11, %p55_p5  ;;  %s1774_s30 = sshll.u32 %s2063_s22, 3 }
  0x3f   : > { %s2092_s28 = scalar_select %p1764_p4, 1, 0 }
  0x40   : > { %s2093_s29 = scalar_select %p1768_p7, 1, 0 }
  0x41   : > { %s1777_s11 = sshll.u32 %s1607_s16, 7  ;;  %p1779_p13 = pnand %p1267_p12, %p51_p8 }
  0x42   : > { %2094 = sst [smem:[#allocation27_spill]] %s2093_s29  ;;  %s385_s12 = sand.u32 1, %s1607_s16  }
  0x43   : > { %s2096_s1 = sld [smem:[#allocation29_spill]]  ;;  %s389_s22 = scalar_lea.vmem [#allocation5], %s1774_s30 }
  0x44   : > { %s396_s3 = sshll.u32 %s389_s22, 4  ;;  %s1613_s5 = smov [#allocation10]   ;;  %s1791_s3 = int_to_ptr.vmem [resolvable:$true] %s396_s3 }
  0x45   : > { %s321_s24 = sshll.u32 %s1613_s5, 4  ;;  %s1793_s17 = scalar_lea.sflag [#allocation6], %s385_s12  ;;  %s322_s24 = int_to_ptr.vmem [resolvable:$true] %s321_s24 }
  0x46   : > { %p1799_p2 = pneg %p1779_p13 }
  0x48   : > { %s2097_s16 = scalar_select %p1799_p2, 1, 0 }
  0x49   : > { %s1788_s26 = scalar_lea.hbm %s2096_s1, %s1777_s11  ;;  %s1370_s22 = scalar_lea.hbm %s2096_s1, 256 }
  0x4a   : > { %s1365_s29 = scalar_lea.hbm %s1788_s26, 128  ;;  %p1371_p10 = scmp.lt.s32.totalorder %s1788_s26, %s2096_s1 }
  0x4b   : > { %p1366_p0 = scmp.ne.s32.totalorder %s1788_s26, %s1365_s29  ;;  %p1372_p11 = scmp.lt.s32.totalorder %s1370_s22, %s1365_s29 }
  0x4d   : > { %p1368_p5 = pnand %p1799_p2, %p1366_p0  ;;  %p1373_p12 = por %p1372_p11, %p1371_p10 }
  0x4f   : > { %p1369_p8 = pneg %p1368_p5 }
  0x51   : > { %p1374_p1 = pnand %p1373_p12, %p1369_p8 }
  0x53   : > { %1377 = shalt.err (!%p1374_p1)
}
  0x54   : > { %s1378_s5 = scalar_lea.vmem %s1791_s3, 128  ;;  %s1614_s12 = smov [#allocation5]  }
  0x55   : > { %p1379_p7 = scmp.ne.s32.totalorder %s1791_s3, %s1378_s5  ;;  %s1383_s25 = sshll.u32 %s1614_s12, 4  ;;  %s1384_s25 = int_to_ptr.vmem [resolvable:$false] %s1383_s25 }
  0x56   : > { %s1385_s21 = scalar_lea.vmem %s1384_s25, 256  ;;  %p1386_p4 = scmp.lt.s32.totalorder %s1791_s3, %s1384_s25 }
  0x57   : > { %p1381_p0 = pnand %p1379_p7, %p1799_p2  ;;  %p1387_p9 = scmp.lt.s32.totalorder %s1385_s21, %s1378_s5 }
  0x59   : > { %p1382_p5 = pneg %p1381_p0  ;;  %p1388_p3 = por %p1387_p9, %p1386_p4 }
  0x5b   : > { %p1389_p6 = pnand %p1388_p3, %p1382_p5 }
  0x5d   : > { %1392 = shalt.err (!%p1389_p6)
}
  0x5e   : > { %1252 = dma.hbm_to_vmem [thread:$0]  (!%p1779_p13), %s1788_s26, 128, %s1791_s3, %s1793_s17  }
  0x5f   : > { %s1404_s10 = scalar_lea.vmem %s322_s24, 512  ;;  %p2098_p7 = scmp.ne.s32.totalorder %s2086_s23, 0 }
  0x60   : > { %p1405_p1 = scmp.ne.s32.totalorder %s322_s24, %s1404_s10  ;;  %p1412_p12 = scmp.lt.s32.totalorder %s322_s24, %s322_s24 }
  0x61   : > { %p2099_p8 = pneg %p2098_p7  ;;  %p1413_p0 = scmp.lt.s32.totalorder %s1404_s10, %s1404_s10 }
  0x63   : > { %p1407_p10 = pnand %p1405_p1, %p2099_p8  ;;  %p1414_p2 = por %p1413_p0, %p1412_p12 }
  0x65   : > { %p1408_p11 = pneg %p1407_p10 }
  0x67   : > { %p1415_p4 = pnand %p1414_p2, %p1408_p11 }
  0x69   : > { %1418 = shalt.err (!%p1415_p4)
}
  0x6a   : > { %s2100_s13 = smov 8   ;;  %s2101_s29 = smov 128  }
  0x6b   : > { %1239 = dma.hbm_to_vmem [thread:$0]  (!%p2098_p7), %s2051_s4, 512, %s322_s24, [#allocation9], %s2101_s29, %s2101_s29, %s2100_s13  }
  0x6c   : > { %s1615_s3 = smov [#allocation13]   ;;  %p2102_p6 = pmov %p2099_p8 }
  0x6d   : > { %s350_s26 = sshll.u32 %s1615_s3, 4  ;;  %s351_s26 = int_to_ptr.vmem [resolvable:$true] %s350_s26 }
  0x6e   : > { %s1430_s12 = scalar_lea.vmem %s351_s26, 2048  ;;  %p1438_p5 = scmp.lt.s32.totalorder %s351_s26, %s351_s26 }
  0x6f   : > { %p1431_p3 = scmp.ne.s32.totalorder %s351_s26, %s1430_s12  ;;  %p1439_p1 = scmp.lt.s32.totalorder %s1430_s12, %s1430_s12 }
  0x71   : > { %p1433_p9 = pnand %p1431_p3, %p2102_p6  ;;  %p1440_p8 = por %p1439_p1, %p1438_p5 }
  0x73   : > { %p1434_p2 = pneg %p1433_p9 }
  0x75   : > { %p1441_p10 = pnand %p1440_p8, %p1434_p2 }
  0x77   : > { %1444 = shalt.err (!%p1441_p10)
}
  0x78   : > { %1245 = dma.hbm_to_vmem [thread:$0]  (!%p2098_p7), %s2054_s7, 2048, %s351_s26, [#allocation12], %s2101_s29, %s2101_s29, %s2100_s13  }
  0x79   : > { %s2103_s0 = sld [smem:[#allocation28_spill]]  ;;  %s371_s23 = scalar_lea.vmem [#allocation2], %s1774_s30 }
  0x7a   : > { %s378_s5 = sshll.u32 %s371_s23, 4  ;;  %s2104_s3 = sand.u32 1, %s1603_s15   ;;  %s379_s5 = int_to_ptr.vmem [resolvable:$true] %s378_s5 }
  0x7b   : > { %s368_s12 = scalar_lea.sflag [#allocation3], %s2104_s3  ;;  %p2105_p12 = scmp.ne.s32.totalorder %s2097_s16, 0 }
  0x7f   : > { %s1848_s22 = scalar_lea.hbm %s2103_s0, %s1777_s11  ;;  %s1450_s29 = scalar_lea.hbm %s2103_s0, 256 }
  0x80   : > { %s1445_s1 = scalar_lea.hbm %s1848_s22, 128  ;;  %p1451_p7 = scmp.lt.s32.totalorder %s1848_s22, %s2103_s0 }
  0x81   : > { %p1446_p11 = scmp.ne.s32.totalorder %s1848_s22, %s1445_s1  ;;  %p1452_p3 = scmp.lt.s32.totalorder %s1450_s29, %s1445_s1 }
  0x83   : > { %p1448_p0 = pnand %p1446_p11, %p2105_p12  ;;  %p1453_p6 = por %p1452_p3, %p1451_p7 }
  0x85   : > { %p1449_p4 = pneg %p1448_p0 }
  0x87   : > { %p1454_p9 = pnand %p1453_p6, %p1449_p4 }
  0x89   : > { %1457 = shalt.err (!%p1454_p9)
}
  0x8a   : > { %s1458_s21 = scalar_lea.vmem %s379_s5, 128  ;;  %s1616_s10 = smov [#allocation2]  }
  0x8b   : > { %p1459_p2 = scmp.ne.s32.totalorder %s379_s5, %s1458_s21  ;;  %s1463_s23 = sshll.u32 %s1616_s10, 4  ;;  %s1464_s23 = int_to_ptr.vmem [resolvable:$false] %s1463_s23 }
  0x8c   : > { %s1465_s3 = scalar_lea.vmem %s1464_s23, 256  ;;  %p1466_p8 = scmp.lt.s32.totalorder %s379_s5, %s1464_s23 }
  0x8d   : > { %p1461_p5 = pnand %p1459_p2, %p2105_p12  ;;  %p1467_p10 = scmp.lt.s32.totalorder %s1465_s3, %s1458_s21 }
  0x8f   : > { %p1462_p1 = pneg %p1461_p5  ;;  %p1468_p11 = por %p1467_p10, %p1466_p8 }
  0x91   : > { %p1469_p0 = pnand %p1468_p11, %p1462_p1 }
  0x93   : > { %1472 = shalt.err (!%p1469_p0)
}
  0x94   : > { %1249 = dma.hbm_to_vmem [thread:$0]  (!%p1779_p13), %s1848_s22, 128, %s379_s5, %s368_s12  }
  0x95   : > { %s412_s13 = scalar_lea.hbm %s2049_s2, %s1777_s11  ;;  %s407_s29 = scalar_lea.vmem [#allocation7], %s1774_s30 }
  0x96   : > { %s414_s26 = sshll.u32 %s407_s29, 4  ;;  %s1473_s25 = scalar_lea.hbm %s412_s13, 128  ;;  %s415_s26 = int_to_ptr.vmem [resolvable:$true] %s414_s26 }
  0x97   : > { %p1474_p4 = scmp.ne.s32.totalorder %s412_s13, %s1473_s25  ;;  %s1478_s23 = scalar_lea.hbm %s2049_s2, 256 }
  0x98   : > { %p1479_p6 = scmp.lt.s32.totalorder %s412_s13, %s2049_s2  ;;  %p1480_p9 = scmp.lt.s32.totalorder %s1478_s23, %s1473_s25 }
  0x99   : > { %p1476_p7 = pnand %p1474_p4, %p2105_p12 }
  0x9a   : > { %p1481_p2 = por %p1480_p9, %p1479_p6 }
  0x9b   : > { %p1477_p3 = pneg %p1476_p7 }
  0x9d   : > { %p1482_p5 = pnand %p1481_p2, %p1477_p3 }
  0x9f   : > { %1485 = shalt.err (!%p1482_p5)
}
  0xa0   : > { %s1486_s30 = scalar_lea.vmem %s415_s26, 128  ;;  %s1617_s11 = smov [#allocation7]  }
  0xa1   : > { %p1487_p1 = scmp.ne.s32.totalorder %s415_s26, %s1486_s30  ;;  %s1491_s22 = sshll.u32 %s1617_s11, 4  ;;  %s1492_s22 = int_to_ptr.vmem [resolvable:$false] %s1491_s22 }
  0xa2   : > { %s1493_s5 = scalar_lea.vmem %s1492_s22, 256  ;;  %p1494_p11 = scmp.lt.s32.totalorder %s415_s26, %s1492_s22 }
  0xa3   : > { %p1489_p8 = pnand %p1487_p1, %p2105_p12  ;;  %p1495_p0 = scmp.lt.s32.totalorder %s1493_s5, %s1486_s30 }
  0xa5   : > { %p1490_p10 = pneg %p1489_p8  ;;  %p1496_p4 = por %p1495_p0, %p1494_p11 }
  0xa7   : > { %p1497_p7 = pnand %p1496_p4, %p1490_p10 }
  0xa9   : > { %1500 = shalt.err (!%p1497_p7)
}
  0xaa   : > { %1255 = dma.hbm_to_vmem [thread:$0]  (!%p1779_p13), %s412_s13, 128, %s415_s26, %s1793_s17  }
  0xab   : > { %p2106_p3 = scmp.ne.s32.totalorder %s2085_s20, 0 }
  0xac   : > { %s1890_s0 = sand.u32 (!%p2106_p3), 1, %s1599_s14   ;;  %p2107_p12 = scmp.ne.s32.totalorder (!%p2106_p3), %s2091_s27, 0 }
  0xad   : > { %423 = sbr.rel (%p2106_p3) target bundleno = 644 (0x284), region = 56  ;;  %s1893_s16 = sshll.u32 (!%p2106_p3), %s1890_s0, 3 }
  0xae   : > { %s426_s12 = scalar_lea.sflag (!%p2106_p3), [#allocation3], %s1890_s0  ;;  %s429_s1 = scalar_lea.vmem (!%p2106_p3), [#allocation2], %s1893_s16 }
  0xb2   : > { %1570 = dma.done.wait (%p2107_p12), %s426_s12, 128  }
  0xb3   : > { %1572 = vsyncadd (%p2107_p12), %s426_s12, 4294967168  ;;  %s434_s20 = sand.u32 1, %s1698_s19   ;;  %s438_s18 = scalar_lea.vmem [#allocation5], %s1893_s16 }
  0xb4   : > { %s435_s17 = scalar_lea.sflag [#allocation6], %s434_s20 }
  0xb5   : > { %1574 = dma.done.wait (%p2107_p12), %s435_s17, 256  }
  0xb6   : > { %1576 = vsyncadd (%p2107_p12), %s435_s17, 4294967040  ;;  %s447_s24 = scalar_lea.vmem [#allocation7], %s1893_s16  ;;  %p2108_p13 = scmp.eq.s32.totalorder %s1698_s19, 0 }
  0xb8   : > { %1578 = dma.done.wait (%p2108_p13), [#allocation9], 1024   ;;  %p2109_p6 = pmov %p2108_p13 }
  0xba   : > { %1580 = vsyncadd (%p2109_p6), [#allocation9], 4294966272  ;;  %p2110_p9 = pmov %p2109_p6 }
  0xbb   : > { %p2111_p2 = pmov %p2109_p6 }
  0xbc   : > { %1582 = dma.done.wait (%p2110_p9), [#allocation12], 2560  }
  0xbd   : > { %1584 = vsyncadd (%p2111_p2), [#allocation12], 4294964736  ;;  %v1618_v0 = vmov 0.0   ;;  %vm1619_vm0 = vmmov 0   ;;  %v525_v1 = vld [vmem:[#allocation10 + $0x18] sm:$0xff]  ;;  %v524_v2 = vld [vmem:[#allocation10 + $0x10] sm:$0xff] }
  0xbe   : > { %1139 = vmatprep.subr.mxu0 %v1618_v0  ;;  %1147 = vmatprep.mubr.msk.f32.mxu0 %vm1619_vm0, %v1618_v0  ;;  %v523_v3 = vld [vmem:[#allocation10 + $0x8] sm:$0xff]  ;;  %v522_v4 = vld [vmem:[#allocation10] sm:$0xff]  ;;  %v775_v5 = vld [vmem:[#allocation13 + $0x78] sm:$0xff]  ;;  %vm526_vm1 = vcmask 261120   ;;  %s1103_s25 = sshll.u32 %s1698_s19, 7  ;;  %s507_s21 = scalar_lea.vmem [#allocation14], %s1893_s16 }
  0xbf   : > { %1172 = vmatprep.subr.mxu1 %v1618_v0  ;;  %1204 = vmatprep.mubr.msk.f32.mxu1 %vm1619_vm0, %v1618_v0  ;;  %v516_v6 = vld [vmem:[%s438_s18] sm:$0xff]  ;;  %v774_v7 = vld [vmem:[#allocation13 + $0x70] sm:$0xff]  ;;  %v521_v8 = vld [vmem:[#allocation8 + $0x18] sm:$0xff]  ;;  %s877_s10 = sshll.u32 %s507_s21, 4  ;;  %s514_s23 = scalar_lea.vmem [#allocation15], %s1893_s16  ;;  %s1976_s10 = int_to_ptr.vmem [resolvable:$true] %s877_s10 }
  0xc0   : > { %1140 = vmatpush3.msra.mxu0 %v525_v1  ;;  %1173 = vmatpush3.msra.mxu1 %v775_v5  ;;  %v520_v9 = vld [vmem:[#allocation8 + $0x10] sm:$0xff]  ;;  %v773_v10 = vld [vmem:[#allocation13 + $0x68] sm:$0xff]  ;;  %v772_v12 = vld [vmem:[#allocation13 + $0x60] sm:$0xff]  ;;  %s890_s3 = sshll.u32 %s514_s23, 4  ;;  %s1974_s22 = scalar_lea.hbm %s2056_s9, %s1103_s25  ;;  %s1983_s3 = int_to_ptr.vmem [resolvable:$true] %s890_s3 }
  0xc1   : > { %1141 = vmatprep.subr.mxu0 %v1618_v0  ;;  %1174 = vmatprep.subr.mxu1 %v1618_v0  ;;  %v519_v11 = vld [vmem:[#allocation8 + $0x8] sm:$0xff]  ;;  %v518_v13 = vld [vmem:[#allocation8] sm:$0xff]  ;;  %v515_v14 = vld [vmem:[%s429_s1] sm:$0xff]  ;;  %s2112_s12 = sld [smem:[#allocation32_spill]]  ;;  %s859_s20 = scalar_lea.sflag [#allocation4], %s1890_s0 }
  0xc2   : > { %1142 = vmatpush3.msra.mxu0 %v524_v2  ;;  %1175 = vmatpush3.msra.mxu1 %v774_v7  ;;  %v676_v15 = vld [vmem:[#allocation11 + $0x18] sm:$0xff]  ;;  %v675_v16 = vld [vmem:[#allocation11 + $0x10] sm:$0xff]  ;;  %v674_v17 = vld [vmem:[#allocation11 + $0x8] sm:$0xff]  ;;  %v517_v18 = vmul.f32 %v516_v6, %v515_v14  ;;  %s1501_s17 = scalar_lea.vmem %s1976_s10, 128  ;;  %p2113_p1 = scmp.ne.s32.totalorder %s2092_s28, 0 }
  0xc3   : > { %1143 = vmatprep.subr.mxu0 %v1618_v0  ;;  %1176 = vmatprep.subr.mxu1 %v1618_v0  ;;  %v673_v19 = vld [vmem:[#allocation11] sm:$0xff]  ;;  %v771_v20 = vld [vmem:[#allocation13 + $0x58] sm:$0xff]  ;;  %v770_v21 = vld [vmem:[#allocation13 + $0x50] sm:$0xff]  ;;  %p1502_p5 = scmp.ne.s32.totalorder %s1976_s10, %s1501_s17  ;;  %s1620_s18 = smov [#allocation14]  }
  0xc4   : > { %1144 = vmatpush3.msra.mxu0 %v523_v3  ;;  %1177 = vmatpush3.msra.mxu1 %v773_v10  ;;  %v769_v22 = vld [vmem:[#allocation13 + $0x48] sm:$0xff]  ;;  %v768_v23 = vld [vmem:[#allocation13 + $0x40] sm:$0xff]  ;;  %v767_v24 = vld [vmem:[#allocation13 + $0x38] sm:$0xff] }
  0xc5   : > { %1145 = vmatprep.subr.mxu0 %v1618_v0  ;;  %1178 = vmatprep.subr.mxu1 %v1618_v0  ;;  %v766_v25 = vld [vmem:[#allocation13 + $0x30] sm:$0xff]  ;;  %v765_v26 = vld [vmem:[#allocation13 + $0x28] sm:$0xff]  ;;  %v764_v27 = vld [vmem:[#allocation13 + $0x20] sm:$0xff]  ;;  %p1503_p8 = pnand %p1502_p5, %p2113_p1 }
  0xc6   : > { %1146 = vmatpush3.msra.mxu0 %v522_v4  ;;  %1179 = vmatpush3.msra.mxu1 %v772_v12  ;;  %v763_v28 = vld [vmem:[#allocation13 + $0x18] sm:$0xff]  ;;  %v762_v29 = vld [vmem:[#allocation13 + $0x10] sm:$0xff]  ;;  %v761_v30 = vld [vmem:[#allocation13 + $0x8] sm:$0xff] }
  0xc7   : > { %1148 = vmatmul.mubr.msk.f32.vlgmr.msra.gmra.mxu0 %vm526_vm1, %v516_v6  ;;  %1150 = vmatprep.subr.mxu0 %v1618_v0  ;;  %v760_v31 = vld [vmem:[#allocation13] sm:$0xff]  ;;  %v1099_v38 = vld [vmem:[%s2053_s6] ss:$0 sm:$0xff]  ;;  %s1981_s1 = scalar_lea.hbm %s2112_s12, %s1103_s25  ;;  %p1504_p10 = pneg %p1503_p8 }
  0xc8   : > { %1151 = vmatpush3.msra.mxu0 %v521_v8  ;;  %1158 = vmatprep.mubr.msk.f32.mxu0 %vm1619_vm0, %v1618_v0  ;;  %v854_v43 = vld [vmem:[%s447_s24] sm:$0xff]  ;;  %s1505_s24 = sshll.u32 %s1620_s18, 4  ;;  %s1506_s24 = int_to_ptr.vmem [resolvable:$false] %s1505_s24 }
  0xc9   : > { %1152 = vmatprep.subr.mxu0 %v1618_v0  ;;  %1180 = vmatprep.subr.mxu1 %v1618_v0  ;;  %v1100_v44 = vld [vmem:[%s2055_s8] ss:$0 sm:$0xff]  ;;  %v855_v46 = vsel %vm526_vm1, %v854_v43, 0.0  ;;  %s1507_s27 = scalar_lea.vmem %s1506_s24, 256  ;;  %p1508_p11 = scmp.lt.s32.totalorder %s1976_s10, %s1506_s24 }
  0xca   : > { %1153 = vmatpush3.msra.mxu0 %v520_v9  ;;  %1181 = vmatpush3.msra.mxu1 %v771_v20  ;;  %p1509_p0 = scmp.lt.s32.totalorder %s1507_s27, %s1501_s17 }
  0xcb   : > { %1154 = vmatprep.subr.mxu0 %v1618_v0  ;;  %1182 = vmatprep.subr.mxu1 %v1618_v0 }
  0xcc   : > { %1155 = vmatpush3.msra.mxu0 %v519_v11  ;;  %1183 = vmatpush3.msra.mxu1 %v770_v21  ;;  %p1510_p4 = por %p1509_p0, %p1508_p11 }
  0xcd   : > { %1156 = vmatprep.subr.mxu0 %v1618_v0  ;;  %1184 = vmatprep.subr.mxu1 %v1618_v0 }
  0xce   : > { %1157 = vmatpush3.msra.mxu0 %v518_v13  ;;  %1185 = vmatpush3.msra.mxu1 %v769_v22  ;;  %p1511_p7 = pnand %p1510_p4, %p1504_p10 }
  0xcf   : > { %1159 = vmatmul.mubr.msk.f32.vlgmr.msra.gmra.mxu0 %vm526_vm1, %v515_v14  ;;  %1161 = vmatprep.subr.mxu0 %v1618_v0 }
  0xd0   : > { %1162 = vmatpush3.msra.mxu0 %v676_v15  ;;  %1169 = vmatprep.mubr.msk.f32.mxu0 %vm1619_vm0, %v1618_v0 }
  0xd1   : > { %1163 = vmatprep.subr.mxu0 %v1618_v0  ;;  %1186 = vmatprep.subr.mxu1 %v1618_v0 }
  0xd2   : > { %1164 = vmatpush3.msra.mxu0 %v675_v16  ;;  %1187 = vmatpush3.msra.mxu1 %v768_v23 }
  0xd3   : > { %1165 = vmatprep.subr.mxu0 %v1618_v0  ;;  %1188 = vmatprep.subr.mxu1 %v1618_v0 }
  0xd4   : > { %1166 = vmatpush3.msra.mxu0 %v674_v17  ;;  %1189 = vmatpush3.msra.mxu1 %v767_v24 }
  0xd5   : > { %1167 = vmatprep.subr.mxu0 %v1618_v0  ;;  %1190 = vmatprep.subr.mxu1 %v1618_v0 }
  0xd6   : > { %1168 = vmatpush3.msra.mxu0 %v673_v19  ;;  %1191 = vmatpush3.msra.mxu1 %v766_v25 }
  0xd7   : > { %1170 = vmatmul.mubr.msk.f32.vlgmr.msra.gmra.mxu0 %vm526_vm1, %v517_v18  ;;  %1192 = vmatprep.subr.mxu1 %v1618_v0 }
  0xd8   : > { %1193 = vmatpush3.msra.mxu1 %v765_v26 }
  0xd9   : > { %1194 = vmatprep.subr.mxu1 %v1618_v0 }
  0xda   : > { %1195 = vmatpush3.msra.mxu1 %v764_v27 }
  0xdb   : > { %1196 = vmatprep.subr.mxu1 %v1618_v0 }
  0xdc   : > { %1197 = vmatpush3.msra.mxu1 %v763_v28 }
  0xdd   : > { %1198 = vmatprep.subr.mxu1 %v1618_v0 }
  0xde   : > { %1199 = vmatpush3.msra.mxu1 %v762_v29 }
  0xdf   : > { %1200 = vmatprep.subr.mxu1 %v1618_v0 }
  0xe0   : > { %1201 = vmatpush3.msra.mxu1 %v761_v30 }
  0xe1   : > { %1202 = vmatprep.subr.mxu1 %v1618_v0 }
  0xe2   : > { %1203 = vmatpush3.msra.mxu1 %v760_v31 }
 0x187   : > { %v596_v32 = vpop.f32.mrf.mxu0 }
 0x189   : > { %v1149_v33 = vpop.f32.mrf.mxu0 }
 0x18f   : > { %v669_v34 = vpop.f32.mrf.mxu0 }
 0x190   : > { %v670_v36 = vadd.f32 %v669_v34, %v596_v32 }
 0x191   : > { %v1160_v35 = vpop.f32.mrf.mxu0 }
 0x197   : > { %v746_v37 = vpop.f32.mrf.mxu0 }
 0x198   : > { %v750_v39 = vadd.f32 %v746_v37, %v670_v36 }
 0x199   : > { %v1171_v40 = vpop.f32.mrf.mxu0 }
 0x19a   : > { %v758_v41 = vadd.f32 %v1099_v38, %v750_v39 }
 0x19c   : > { %v759_v42 = vmax.f32 %v758_v41, 0.0 }
 0x19e   : > { %1205 = vmatmul.mubr.f32.vlgmr.msra.gmra.mxu1 %v759_v42 }
 0x25e   : > { %v849_v45 = vpop.f32.mrf.mxu1 }
 0x25f   : > { %v850_v47 = vadd.f32 %v1100_v44, %v849_v45 }
 0x260   : > { %v1206_v48 = vpop.f32.mrf.mxu1 }
 0x261   : > { %853 = vst [vmem:[%s507_s21] sm:$0xff] %v850_v47  ;;  %v856_v49 = vsub.f32 %v850_v47, %v855_v46 }
 0x262   : > { %1514 = shalt.err (!%p1511_p7)
}
 0x263   : > { %s1515_s13 = scalar_lea.hbm %s1974_s22, 128  ;;  %s1519_s25 = scalar_lea.hbm %s2056_s9, 256 }
 0x264   : > { %p1516_p3 = scmp.ne.s32.totalorder %s1974_s22, %s1515_s13  ;;  %p1520_p6 = scmp.lt.s32.totalorder %s1974_s22, %s2056_s9 }
 0x265   : > { %p1521_p9 = scmp.lt.s32.totalorder %s1519_s25, %s1515_s13 }
 0x266   : > { %p1517_p12 = pnand %p1516_p3, %p2113_p1 }
 0x267   : > { %p1522_p2 = por %p1521_p9, %p1520_p6 }
 0x268   : > { %p1518_p13 = pneg %p1517_p12 }
 0x26a   : > { %p1523_p5 = pnand %p1522_p2, %p1518_p13 }
 0x26c   : > { %1526 = shalt.err (!%p1523_p5)
}
 0x26d   : > { %1229 = dma.vmem_to_hbm [thread:$0]  (%p2113_p1), %s1976_s10, 128, %s1974_s22, %s859_s20   ;;  %857 = vst [vmem:[%s514_s23] sm:$0xff] %v856_v49 }
 0x26e   : > { %s864_s11 = scalar_lea.sflag [#allocation16], %s1890_s0  ;;  %s1527_s19 = scalar_lea.vmem %s1983_s3, 128 }
 0x26f   : > { %p1528_p8 = scmp.ne.s32.totalorder %s1983_s3, %s1527_s19  ;;  %s1621_s5 = smov [#allocation15]  }
 0x270   : > { %s1531_s17 = sshll.u32 %s1621_s5, 4  ;;  %s1532_s17 = int_to_ptr.vmem [resolvable:$false] %s1531_s17 }
 0x271   : > { %p1529_p10 = pnand %p1528_p8, %p2113_p1  ;;  %s1533_s18 = scalar_lea.vmem %s1532_s17, 256 }
 0x272   : > { %p1534_p0 = scmp.lt.s32.totalorder %s1983_s3, %s1532_s17  ;;  %p1535_p4 = scmp.lt.s32.totalorder %s1533_s18, %s1527_s19 }
 0x273   : > { %p1530_p11 = pneg %p1529_p10 }
 0x274   : > { %p1536_p7 = por %p1535_p4, %p1534_p0 }
 0x276   : > { %p1537_p3 = pnand %p1536_p7, %p1530_p11 }
 0x278   : > { %1540 = shalt.err (!%p1537_p3)
}
 0x279   : > { %s1541_s16 = scalar_lea.hbm %s1981_s1, 128  ;;  %s1545_s23 = scalar_lea.hbm %s2112_s12, 256 }
 0x27a   : > { %p1542_p12 = scmp.ne.s32.totalorder %s1981_s1, %s1541_s16  ;;  %p1546_p9 = scmp.lt.s32.totalorder %s1981_s1, %s2112_s12 }
 0x27b   : > { %p1547_p2 = scmp.lt.s32.totalorder %s1545_s23, %s1541_s16 }
 0x27c   : > { %p1543_p13 = pnand %p1542_p12, %p2113_p1 }
 0x27d   : > { %p1548_p5 = por %p1547_p2, %p1546_p9 }
 0x27e   : > { %p1544_p6 = pneg %p1543_p13 }
 0x280   : > { %p1549_p8 = pnand %p1548_p5, %p1544_p6 }
 0x282   : > { %1552 = shalt.err (!%p1549_p8)
}
 0x283   : > { %1230 = dma.vmem_to_hbm [thread:$0]  (%p2113_p1), %s1983_s3, 128, %s1981_s1, %s864_s11  }
 0x284 PF: > { %s2114_s24 = sld [smem:[#allocation23_spill]] }
 0x285   : > { %s2115_s27 = sld [smem:[#allocation27_spill]] }
 0x286   : > { %s2116_s13 = sld [smem:[#allocation24_spill]] }
 0x28a   : > { %s902_s29 = sand.u32 1, %s2114_s24  }
 0x28b   : > { %p2117_p10 = scmp.ne.s32.totalorder %s2115_s27, 0  ;;  %s903_s26 = scalar_lea.sflag [#allocation4], %s902_s29 }
 0x28c   : > { %p2118_p11 = scmp.ge.s32.totalorder %s2116_s13, 2 }
 0x28e   : > { %p1257_p0 = pnand %p2118_p11, %p2117_p10 }
 0x290   : > { %p1258_p4 = pneg %p1257_p0 }
 0x292   : > { %1586 = dma.done.wait (%p1258_p4), %s903_s26, 128  }
 0x293   : > { %1588 = vsyncadd (%p1258_p4), %s903_s26, 4294967168  ;;  %s912_s25 = scalar_lea.sflag [#allocation16], %s902_s29 }
 0x294   : > { %1590 = dma.done.wait (%p1258_p4), %s912_s25, 128  }
 0x295   : > { %1592 = vsyncadd (%p1258_p4), %s912_s25, 4294967168  ;;  %s2119_s16 = sld [smem:[#allocation25_spill]]  ;;  %s2121_s13 = smov %s1599_s14 }
 0x296   : > { %s2120_s28 = sld [smem:[#allocation26_spill]]  ;;  %s2122_s14 = smov %s1603_s15 }
 0x29b   : > { %p32_p1 = scmp.ge.s32.totalorder %s2119_s16, 4  }
 0x29c   : > { %s2123_s15 = smov %s2120_s28 }
 0x29d   :  { %34 = sbr.rel (!%p32_p1) target bundleno = 17 (0x11), region = 158 }
 0x2a2   :  { %917 = vsyncpa [#allocation3], 1 }
 0x2a3   :  { %919 = vsyncpa [#allocation3 + $0x1], 1 }
 0x2a4   :  { %920 = vsyncpa [#allocation6], 1 }
 0x2a5   :  { %922 = vsyncpa [#allocation6 + $0x1], 1 }
 0x2a6   :  { %923 = vsyncpa [#allocation9], 1 }
 0x2a7   :  { %924 = vsyncpa [#allocation12], 1 }
 0x2a8   :  { %925 = vsyncpa [#allocation4], 1 }
 0x2a9   :  { %927 = vsyncpa [#allocation4 + $0x1], 1 }
 0x2aa   :  { %928 = vsyncpa [#allocation16], 1 }
 0x2ab   :  { %930 = vsyncpa [#allocation16 + $0x1], 1 }

</bundles_post_ra>
